<compile_context>
chip_gen: v7x
topology: tpu7x:2x2x1
jax: 0.10.0
libtpu: 0.0.40
codegen_flags: <defaults>
</compile_context>

<pallas_src>
import jax
import jax.numpy as jnp
from jax.experimental import pallas as pl
from jax.experimental.pallas import tpu as pltpu
from jax.scipy.linalg import block_diag


def _round_up(x, m):
    return (x + m - 1) // m * m


# ----------------------------- Pallas kernel --------------------------------
def _critic_kernel(s_ref, w1_ref, b1_ref, w2_ref, b2_ref, w3_ref, b3_ref,
                   o_ref):
    # fc1 + tanh: s arrives f32; cast to bf16 in-kernel (free on the VPU) so
    # the MXU runs bf16 operands with f32 accumulation; epilogue stays f32.
    x = s_ref[...].astype(jnp.bfloat16)
    h = jnp.dot(x, w1_ref[...], preferred_element_type=jnp.float32)
    h = jnp.tanh(h + b1_ref[...])
    # fc2 + tanh
    h = jnp.dot(h.astype(jnp.bfloat16), w2_ref[...],
                preferred_element_type=jnp.float32)
    h = jnp.tanh(h + b2_ref[...])
    # fc3 (value head), all f32.
    if w3_ref.shape[0] == 1:
        # Unfolded fallback: [1, H] row -> VPU multiply + lane reduction.
        v = jnp.sum(h * w3_ref[...], axis=-1, keepdims=True)
    else:
        # Lane-folded path: block-diagonal [F*H, F] head on the (idle) MXU.
        v = jnp.dot(h, w3_ref[...], preferred_element_type=jnp.float32)
    o_ref[...] = v + b3_ref[...]


def critic_forward(s, params, *, block_b=65536):
    """Fused CriticNetwork forward. s: [B, state_dim] f32 -> [B, 1] f32."""
    w1, b1, w2, b2, w3, b3 = params
    B, S = s.shape
    H = w1.shape[1]

    # ---- lane folding: pack F consecutive rows into the 128-lane axis -------
    fold = 128 // S if (S < 128 and 128 % S == 0) else 1
    F = fold if (fold > 1 and B % fold == 0 and fold * H <= 1024) else 1

    if F > 1:
        s_in = s.reshape(B // F, F * S)                       # [B/F, 128] lane-dense
        w1k = block_diag(*([w1] * F)).astype(w1.dtype)        # [F*S, F*H]
        w2k = block_diag(*([w2] * F)).astype(w2.dtype)        # [F*H, F*H]
        w3k = block_diag(*([w3.T] * F)).astype(jnp.float32)   # [F*H, F]
        b1k = jnp.tile(b1, (1, F))
        b2k = jnp.tile(b2, (1, F))
        b3k = jnp.tile(b3, (1, F))
    else:
        s_in, w1k, w2k, b1k, b2k = s, w1, w2, b1, b2
        w3k, b3k = w3, b3                                     # [1, H], [1, 1]

    rows = s_in.shape[0]

    # ---- batch tile: as large as VMEM comfortably allows, but keep >= 2 grid
    # steps when possible so the "parallel" axis can use both v7x TensorCores.
    tbf_cap = max(8, block_b // F)
    if rows <= 8:
        tbf = rows                                    # single full-extent block
    else:
        half = _round_up((rows + 1) // 2, 8)
        tbf = max(8, min(tbf_cap, half))
    grid = pl.cdiv(rows, tbf)          # ragged tail handled by Pallas masking

    out_w = w3k.shape[1] if F > 1 else 1

    # Weights/biases: full-array blocks with a constant index_map -> DMA'd once
    # and VMEM-resident across all grid steps (no per-step re-fetch).
    def resident(a):
        return pl.BlockSpec(a.shape, lambda i: (0,) * a.ndim)

    out = pl.pallas_call(
        _critic_kernel,
        out_shape=jax.ShapeDtypeStruct((rows, out_w), jnp.float32),
        grid=(grid,),
        in_specs=[
            pl.BlockSpec((tbf, s_in.shape[1]), lambda i: (i, 0)),  # streamed s
            resident(w1k), resident(b1k),
            resident(w2k), resident(b2k),
            resident(w3k), resident(b3k),
        ],
        out_specs=pl.BlockSpec((tbf, out_w), lambda i: (i, 0)),
        compiler_params=pltpu.CompilerParams(
            dimension_semantics=("parallel",),     # shard batch over TCs (v7x)
            vmem_limit_bytes=48 * 1024 * 1024,     # <= v7x 64 MiB physical
        ),
    )(s_in, w1k, b1k, w2k, b2k, w3k, b3k)

    # [rows, F] is row-major contiguous with [B, 1]; reshape is free.
    return out.reshape(B, 1)


# --------------------------- parameter init ----------------------------------
def _orthogonal(key, shape, gain=1.0, dtype=jnp.float32):
    """Orthogonal init matching torch.nn.init.orthogonal_ semantics."""
    rows, cols = shape
    n = max(rows, cols)
    a = jax.random.normal(key, (n, min(rows, cols)), dtype=jnp.float32)
    q, r = jnp.linalg.qr(a)
    d = jnp.diag(r)
    q = q * jnp.where(d == 0, 1.0, jnp.sign(d))[None, :]
    if rows < cols:
        q = q.T
    return (gain * q[:rows, :cols]).astype(dtype)


def init_critic_params(key, state_dim, hidden_width):
    """Weights stored [in, out] (transpose of nn.Linear's [out, in]).
    fc1/fc2 in bf16 (MXU operands); biases and the fc3 row stay f32."""
    k1, k2, k3 = jax.random.split(key, 3)
    w1 = _orthogonal(k1, (hidden_width, state_dim)).T.astype(jnp.bfloat16)
    w2 = _orthogonal(k2, (hidden_width, hidden_width)).T.astype(jnp.bfloat16)
    w3 = _orthogonal(k3, (1, hidden_width))             # [1, H] row, f32
    b1 = jnp.zeros((1, hidden_width), jnp.float32)
    b2 = jnp.zeros((1, hidden_width), jnp.float32)
    b3 = jnp.zeros((1, 1), jnp.float32)
    return (w1, b1, w2, b2, w3, b3)


# ------------------------- pure-JAX reference --------------------------------
def critic_reference(s, params):
    """Reference with the same quantization points as the kernel
    (bf16 MXU operands, f32 accumulation, f32 tanh/bias/head)."""
    w1, b1, w2, b2, w3, b3 = params
    hp = jax.lax.Precision.HIGHEST
    x = s.astype(jnp.bfloat16).astype(jnp.float32)
    h = jnp.tanh(jnp.dot(x, w1.astype(jnp.float32), precision=hp) + b1)
    h = jnp.tanh(jnp.dot(h.astype(jnp.bfloat16).astype(jnp.float32),
                         w2.astype(jnp.float32), precision=hp) + b2)
    return jnp.sum(h * w3, axis=-1, keepdims=True) + b3


# ------------------------------- main ----------------------------------------
if __name__ == "__main__":
    key = jax.random.PRNGKey(0)
    k_params, k_input = jax.random.split(key)

    batch = 8
    state_dim = 16
    hidden_width = 32

    params = init_critic_params(k_params, state_dim, hidden_width)
    s = jax.random.normal(k_input, (batch, state_dim), dtype=jnp.float32)

    v = jax.block_until_ready(critic_forward(s, params))
    v_ref = critic_reference(s, params)
    assert v.shape == (batch, 1)
    assert jnp.allclose(v, v_ref, atol=3e-4, rtol=1e-3), (
        f"mismatch: max abs err {jnp.max(jnp.abs(v - v_ref))}")

    # Lane-folded, multi-tile path with a ragged last tile (no jnp.pad).
    s_big = jax.random.normal(jax.random.PRNGKey(1), (1000, state_dim),
                              dtype=jnp.float32)
    v_big = jax.block_until_ready(critic_forward(s_big, params, block_b=4096))
    v_big_ref = critic_reference(s_big, params)
    assert v_big.shape == (1000, 1)
    assert jnp.allclose(v_big, v_big_ref, atol=3e-4, rtol=1e-3), (
        f"mismatch (tiled): max abs err {jnp.max(jnp.abs(v_big - v_big_ref))}")

    # Unfolded fallback (batch not a multiple of 8), ragged tile as well.
    s_odd = jax.random.normal(jax.random.PRNGKey(2), (37, state_dim),
                              dtype=jnp.float32)
    v_odd = jax.block_until_ready(critic_forward(s_odd, params))
    v_odd_ref = critic_reference(s_odd, params)
    assert v_odd.shape == (37, 1)
    assert jnp.allclose(v_odd, v_odd_ref, atol=3e-4, rtol=1e-3), (
        f"mismatch (fallback): max abs err {jnp.max(jnp.abs(v_odd - v_odd_ref))}")

    print("KERNEL_OK")
</pallas_src>

<mosaic_0001>
module attributes {stable_mosaic.version = 11 : i64} {
  func.func @_critic_kernel(%arg0: i32, %arg1: memref<1x128xf32, #tpu.memory_space<vmem>>, %arg2: memref<128x256xbf16, #tpu.memory_space<vmem>>, %arg3: memref<1x256xf32, #tpu.memory_space<vmem>>, %arg4: memref<256x256xbf16, #tpu.memory_space<vmem>>, %arg5: memref<1x256xf32, #tpu.memory_space<vmem>>, %arg6: memref<256x8xf32, #tpu.memory_space<vmem>>, %arg7: memref<1x8xf32, #tpu.memory_space<vmem>>, %arg8: memref<1x8xf32, #tpu.memory_space<vmem>>) attributes {dimension_semantics = [#tpu.dimension_semantics<parallel>], iteration_bounds = array<i64: 1>, scalar_prefetch = 0 : i64, scratch_operands = 0 : i64, tpu.core_type = #tpu.core_type<tc>, window_params = [{transform_indices = @transform_0, window_bounds = array<i64: 1, 128>}, {pipeline_mode = #tpu.pipeline_mode<synchronous>, transform_indices = @transform_1, window_bounds = array<i64: 128, 256>}, {pipeline_mode = #tpu.pipeline_mode<synchronous>, transform_indices = @transform_2, window_bounds = array<i64: 1, 256>}, {pipeline_mode = #tpu.pipeline_mode<synchronous>, transform_indices = @transform_3, window_bounds = array<i64: 256, 256>}, {pipeline_mode = #tpu.pipeline_mode<synchronous>, transform_indices = @transform_4, window_bounds = array<i64: 1, 256>}, {pipeline_mode = #tpu.pipeline_mode<synchronous>, transform_indices = @transform_5, window_bounds = array<i64: 256, 8>}, {pipeline_mode = #tpu.pipeline_mode<synchronous>, transform_indices = @transform_6, window_bounds = array<i64: 1, 8>}, {transform_indices = @transform_7, window_bounds = array<i64: 1, 8>}]} {
    %c0 = arith.constant 0 : index
    %c0_0 = arith.constant 0 : index
    %0 = vector.load %arg1[%c0, %c0_0] : memref<1x128xf32, #tpu.memory_space<vmem>>, vector<1x128xf32>
    %1 = arith.truncf %0 : vector<1x128xf32> to vector<1x128xbf16>
    %c0_1 = arith.constant 0 : index
    %c0_2 = arith.constant 0 : index
    %2 = vector.load %arg2[%c0_1, %c0_2] : memref<128x256xbf16, #tpu.memory_space<vmem>>, vector<128x256xbf16>
    %cst = arith.constant dense<0.000000e+00> : vector<1x256xf32>
    %3 = tpu.matmul %1, %2, %cst {dimension_numbers = #tpu.dot_dimension_numbers<[1], [0], [0], [1], [0, 0, 1, 1], [], []>} : vector<1x128xbf16>, vector<128x256xbf16>, vector<1x256xf32> -> vector<1x256xf32>
    %c0_3 = arith.constant 0 : index
    %c0_4 = arith.constant 0 : index
    %4 = vector.load %arg3[%c0_3, %c0_4] : memref<1x256xf32, #tpu.memory_space<vmem>>, vector<1x256xf32>
    %5 = arith.addf %3, %4 : vector<1x256xf32>
    %6 = math.tanh %5 : vector<1x256xf32>
    %7 = arith.truncf %6 : vector<1x256xf32> to vector<1x256xbf16>
    %c0_5 = arith.constant 0 : index
    %c0_6 = arith.constant 0 : index
    %8 = vector.load %arg4[%c0_5, %c0_6] : memref<256x256xbf16, #tpu.memory_space<vmem>>, vector<256x256xbf16>
    %cst_7 = arith.constant dense<0.000000e+00> : vector<1x256xf32>
    %9 = tpu.matmul %7, %8, %cst_7 {dimension_numbers = #tpu.dot_dimension_numbers<[1], [0], [0], [1], [0, 0, 1, 1], [], []>} : vector<1x256xbf16>, vector<256x256xbf16>, vector<1x256xf32> -> vector<1x256xf32>
    %c0_8 = arith.constant 0 : index
    %c0_9 = arith.constant 0 : index
    %10 = vector.load %arg5[%c0_8, %c0_9] : memref<1x256xf32, #tpu.memory_space<vmem>>, vector<1x256xf32>
    %11 = arith.addf %9, %10 : vector<1x256xf32>
    %12 = math.tanh %11 : vector<1x256xf32>
    %c0_10 = arith.constant 0 : index
    %c0_11 = arith.constant 0 : index
    %13 = vector.load %arg6[%c0_10, %c0_11] : memref<256x8xf32, #tpu.memory_space<vmem>>, vector<256x8xf32>
    %cst_12 = arith.constant dense<0.000000e+00> : vector<1x8xf32>
    %14 = tpu.matmul %12, %13, %cst_12 {dimension_numbers = #tpu.dot_dimension_numbers<[1], [0], [0], [1], [0, 0, 1, 1], [], []>} : vector<1x256xf32>, vector<256x8xf32>, vector<1x8xf32> -> vector<1x8xf32>
    %c0_13 = arith.constant 0 : index
    %c0_14 = arith.constant 0 : index
    %15 = vector.load %arg7[%c0_13, %c0_14] : memref<1x8xf32, #tpu.memory_space<vmem>>, vector<1x8xf32>
    %16 = arith.addf %14, %15 : vector<1x8xf32>
    %c0_15 = arith.constant 0 : index
    %c0_16 = arith.constant 0 : index
    %17 = vector.load %arg8[%c0_15, %c0_16] : memref<1x8xf32, #tpu.memory_space<vmem>>, vector<1x8xf32>
    tpu.vector_store %arg8[%c0_15, %c0_16], %16 {strides = array<i32>} : memref<1x8xf32, #tpu.memory_space<vmem>>, vector<1x8xf32>,
    return
  }
  func.func @transform_0(%arg0: i32) -> (i32, i32) {
    %c0_i32 = arith.constant 0 : i32
    %c0_i32_0 = arith.constant 0 : i32
    return %arg0, %c0_i32 : i32, i32
  }
  func.func @transform_1(%arg0: i32) -> (i32, i32) {
    %c0_i32 = arith.constant 0 : i32
    %c0_i32_0 = arith.constant 0 : i32
    %c0_i32_1 = arith.constant 0 : i32
    return %c0_i32, %c0_i32_0 : i32, i32
  }
  func.func @transform_2(%arg0: i32) -> (i32, i32) {
    %c0_i32 = arith.constant 0 : i32
    %c0_i32_0 = arith.constant 0 : i32
    %c0_i32_1 = arith.constant 0 : i32
    return %c0_i32, %c0_i32_0 : i32, i32
  }
  func.func @transform_3(%arg0: i32) -> (i32, i32) {
    %c0_i32 = arith.constant 0 : i32
    %c0_i32_0 = arith.constant 0 : i32
    %c0_i32_1 = arith.constant 0 : i32
    return %c0_i32, %c0_i32_0 : i32, i32
  }
  func.func @transform_4(%arg0: i32) -> (i32, i32) {
    %c0_i32 = arith.constant 0 : i32
    %c0_i32_0 = arith.constant 0 : i32
    %c0_i32_1 = arith.constant 0 : i32
    return %c0_i32, %c0_i32_0 : i32, i32
  }
  func.func @transform_5(%arg0: i32) -> (i32, i32) {
    %c0_i32 = arith.constant 0 : i32
    %c0_i32_0 = arith.constant 0 : i32
    %c0_i32_1 = arith.constant 0 : i32
    return %c0_i32, %c0_i32_0 : i32, i32
  }
  func.func @transform_6(%arg0: i32) -> (i32, i32) {
    %c0_i32 = arith.constant 0 : i32
    %c0_i32_0 = arith.constant 0 : i32
    %c0_i32_1 = arith.constant 0 : i32
    return %c0_i32, %c0_i32_0 : i32, i32
  }
  func.func @transform_7(%arg0: i32) -> (i32, i32) {
    %c0_i32 = arith.constant 0 : i32
    %c0_i32_0 = arith.constant 0 : i32
    return %arg0, %c0_i32 : i32, i32
  }
}

</mosaic_0001>

<bundles_post_ra>
// kernel: tpu_custom_call.1
= control target key start
LH: loop header
LB: loop body
LE: loop exit
PB: predicated region body
PF: predicated region fallthrough
CT: control target
= control target key end

     0   :  { %12 = vsyncpa [#allocation3], 0  ;;  %s1085_s0 = inlined_call_operand.vmem [shape: f32[1,128], index: 0, kind: input, shape index: {}]   ;;  %s1086_s1 = inlined_call_operand.hbm [shape: bf16[128,256], index: 1, kind: input, shape index: {}]   ;;  %s1087_s2 = inlined_call_operand.vmem [shape: f32[1,256], index: 2, kind: input, shape index: {}]   ;;  %s1088_s3 = inlined_call_operand.vmem [shape: bf16[256,256], index: 3, kind: input, shape index: {}]   ;;  %s1089_s4 = inlined_call_operand.vmem [shape: f32[1,256], index: 4, kind: input, shape index: {}]   ;;  %s1090_s5 = inlined_call_operand.vmem [shape: f32[256,8], index: 5, kind: input, shape index: {}]   ;;  %s1091_s6 = inlined_call_operand.vmem [shape: f32[1,8], index: 6, kind: input, shape index: {}]   ;;  %s1092_s7 = inlined_call_operand.hbm [shape: f32[1,8], index: 7, kind: output, shape index: {}]  }
   0x1   :  { %13 = vsyncpa [#allocation4], 0  ;;  %s812_s24 = smov [#allocation2]   ;;  %s764_s28 = scalar_lea.hbm %s1086_s1, 2048 }
   0x2   :  { %s21_s25 = sshll.u32 %s812_s24, 4  ;;  %p765_p0 = scmp.ne.s32.totalorder %s1086_s1, %s764_s28  ;;  %s22_s25 = int_to_ptr.vmem [resolvable:$true] %s21_s25 }
   0x3   :  { %p768_p1 = scmp.lt.u32.totalorder %s764_s28, %s1086_s1 }
   0x5   :  { %p770_p2 = pnand %p768_p1, %p765_p0 }
   0x7   :  { %773 = shalt.err (!%p770_p2)
}
   0x8   :  { %s774_s10 = scalar_lea.vmem %s22_s25, 2048  ;;  %p779_p4 = scmp.lt.s32.totalorder %s22_s25, %s22_s25 }
   0x9   :  { %p775_p3 = scmp.ne.s32.totalorder %s22_s25, %s774_s10  ;;  %p780_p5 = scmp.lt.s32.totalorder %s774_s10, %s774_s10 }
   0xb   :  { %p781_p6 = por %p780_p5, %p779_p4 }
   0xd   :  { %p782_p7 = pnand %p781_p6, %p775_p3 }
   0xf   :  { %785 = shalt.err (!%p782_p7)
}
  0x10   :  { %s813_s11 = smov 128   ;;  %s814_s12 = smov 8  }
  0x11   :  { %27 = dma.hbm_to_vmem [thread:$0]  %s1086_s1, 2048, %s22_s25, [#allocation3], %s813_s11, %s813_s11, %s814_s12  }
  0x12   :  { %808 = dma.done.wait [#allocation3], 2048  }
  0x13   :  { %809 = vsyncadd [#allocation3], 4294965248  ;;  %v815_v0 = vmov 0   ;;  %v684_v1 = vld [vmem:[#allocation2 + $0x4] ss:$8 sps:$4 sm:$0xff]   ;;  %v462_v56 = vld [vmem:[%s1090_s5 + $0x90] sm:$0xff] }
  0x14   :  { %184 = vmatprep.mubr.bf16.mxu0 %v815_v0  ;;  %v686_v2 = vld [vmem:[#allocation2] ss:$8 sps:$4 sm:$0xff]   ;;  %152 = vmatprep.subr.bf16.mxu0 %v684_v1  ;;  %v687_v3 = vld [vmem:[#allocation2 + $0x14] ss:$8 sps:$4 sm:$0xff]   ;;  %v689_v4 = vld [vmem:[#allocation2 + $0x10] ss:$8 sps:$4 sm:$0xff]  }
  0x15   :  { %153 = vmatpush1.bf16.msra.mxu0 %v686_v2  ;;  %v690_v5 = vld [vmem:[#allocation2 + $0x24] ss:$8 sps:$4 sm:$0xff]   ;;  %v692_v6 = vld [vmem:[#allocation2 + $0x20] ss:$8 sps:$4 sm:$0xff]   ;;  %v693_v7 = vld [vmem:[#allocation2 + $0x34] ss:$8 sps:$4 sm:$0xff]  }
  0x16   :  { %154 = vmatprep.subr.bf16.mxu0 %v687_v3  ;;  %v695_v8 = vld [vmem:[#allocation2 + $0x30] ss:$8 sps:$4 sm:$0xff]   ;;  %v696_v9 = vld [vmem:[#allocation2 + $0x44] ss:$8 sps:$4 sm:$0xff]   ;;  %v710_v11 = vld [vmem:[%s1088_s3] ss:$8 sps:$4 sm:$0xff]  }
  0x17   :  { %v708_v10 = vld [vmem:[%s1088_s3 + $0x4] ss:$8 sps:$4 sm:$0xff]   ;;  %v711_v12 = vld [vmem:[%s1088_s3 + $0x14] ss:$8 sps:$4 sm:$0xff]   ;;  %v698_v13 = vld [vmem:[#allocation2 + $0x40] ss:$8 sps:$4 sm:$0xff]  }
  0x18   :  { %401 = vmatprep.subr.bf16.mxu1 %v708_v10  ;;  %v713_v14 = vld [vmem:[%s1088_s3 + $0x10] ss:$8 sps:$4 sm:$0xff]   ;;  %v714_v15 = vld [vmem:[%s1088_s3 + $0x24] ss:$8 sps:$4 sm:$0xff]   ;;  %v699_v16 = vld [vmem:[#allocation2 + $0x54] ss:$8 sps:$4 sm:$0xff]  }
  0x19   :  { %155 = vmatpush1.bf16.msra.mxu0 %v689_v4  ;;  %402 = vmatpush1.bf16.msra.mxu1 %v710_v11  ;;  %v701_v17 = vld [vmem:[#allocation2 + $0x50] ss:$8 sps:$4 sm:$0xff]   ;;  %v716_v18 = vld [vmem:[%s1088_s3 + $0x20] ss:$8 sps:$4 sm:$0xff]   ;;  %v717_v19 = vld [vmem:[%s1088_s3 + $0x34] ss:$8 sps:$4 sm:$0xff]   ;;  %v142_v11 = vlaneseq }
  0x1a   :  { %156 = vmatprep.subr.bf16.mxu0 %v690_v5  ;;  %403 = vmatprep.subr.bf16.mxu1 %v711_v12  ;;  %v702_v20 = vld [vmem:[#allocation2 + $0x64] ss:$8 sps:$4 sm:$0xff]   ;;  %v704_v21 = vld [vmem:[#allocation2 + $0x60] ss:$8 sps:$4 sm:$0xff]   ;;  %v719_v22 = vld [vmem:[%s1088_s3 + $0x30] ss:$8 sps:$4 sm:$0xff]  }
  0x1b   :  { %v720_v23 = vld [vmem:[%s1088_s3 + $0x44] ss:$8 sps:$4 sm:$0xff]   ;;  %v705_v24 = vld [vmem:[#allocation2 + $0x74] ss:$8 sps:$4 sm:$0xff]   ;;  %v707_v25 = vld [vmem:[#allocation2 + $0x70] ss:$8 sps:$4 sm:$0xff]  }
  0x1c   :  { %v42_v26 = vld [vmem:[%s1085_s0] sm:$0x1]  ;;  %v723_v28 = vld [vmem:[%s1088_s3 + $0x54] ss:$8 sps:$4 sm:$0xff]   ;;  %v725_v30 = vld [vmem:[%s1088_s3 + $0x50] ss:$8 sps:$4 sm:$0xff]  }
  0x1d   :  { %157 = vmatpush1.bf16.msra.mxu0 %v692_v6  ;;  %404 = vmatpush1.bf16.msra.mxu1 %v713_v14  ;;  %v722_v27 = vld [vmem:[%s1088_s3 + $0x40] ss:$8 sps:$4 sm:$0xff]   ;;  %v43_v29 = vpack.c.bf16 %v42_v26, %v42_v26  ;;  %v726_v31 = vld [vmem:[%s1088_s3 + $0x64] ss:$8 sps:$4 sm:$0xff]   ;;  %v729_v33 = vld [vmem:[%s1088_s3 + $0x74] ss:$8 sps:$4 sm:$0xff]  }
  0x1e   :  { %158 = vmatprep.subr.bf16.mxu0 %v693_v7  ;;  %405 = vmatprep.subr.bf16.mxu1 %v714_v15  ;;  %v728_v32 = vld [vmem:[%s1088_s3 + $0x60] ss:$8 sps:$4 sm:$0xff]   ;;  %v731_v34 = vld [vmem:[%s1088_s3 + $0x70] ss:$8 sps:$4 sm:$0xff]   ;;  %v732_v35 = vld [vmem:[%s1088_s3 + $0x84] ss:$8 sps:$4 sm:$0xff]  }
  0x1f   :  { %v734_v36 = vld [vmem:[%s1088_s3 + $0x80] ss:$8 sps:$4 sm:$0xff]   ;;  %v735_v37 = vld [vmem:[%s1088_s3 + $0x94] ss:$8 sps:$4 sm:$0xff]   ;;  %v737_v38 = vld [vmem:[%s1088_s3 + $0x90] ss:$8 sps:$4 sm:$0xff]  }
  0x20   :  { %v738_v39 = vld [vmem:[%s1088_s3 + $0xa4] ss:$8 sps:$4 sm:$0xff]   ;;  %v740_v40 = vld [vmem:[%s1088_s3 + $0xa0] ss:$8 sps:$4 sm:$0xff]   ;;  %v741_v41 = vld [vmem:[%s1088_s3 + $0xb4] ss:$8 sps:$4 sm:$0xff]  }
  0x21   :  { %159 = vmatpush1.bf16.msra.mxu0 %v695_v8  ;;  %406 = vmatpush1.bf16.msra.mxu1 %v716_v18  ;;  %v743_v42 = vld [vmem:[%s1088_s3 + $0xb0] ss:$8 sps:$4 sm:$0xff]   ;;  %v744_v43 = vld [vmem:[%s1088_s3 + $0xc4] ss:$8 sps:$4 sm:$0xff]   ;;  %v746_v44 = vld [vmem:[%s1088_s3 + $0xc0] ss:$8 sps:$4 sm:$0xff]  }
  0x22   :  { %160 = vmatprep.subr.bf16.mxu0 %v696_v9  ;;  %407 = vmatprep.subr.bf16.mxu1 %v717_v19  ;;  %v747_v45 = vld [vmem:[%s1088_s3 + $0xd4] ss:$8 sps:$4 sm:$0xff]   ;;  %v749_v46 = vld [vmem:[%s1088_s3 + $0xd0] ss:$8 sps:$4 sm:$0xff]   ;;  %v750_v47 = vld [vmem:[%s1088_s3 + $0xe4] ss:$8 sps:$4 sm:$0xff]  }
  0x23   :  { %v752_v48 = vld [vmem:[%s1088_s3 + $0xe0] ss:$8 sps:$4 sm:$0xff]   ;;  %v753_v49 = vld [vmem:[%s1088_s3 + $0xf4] ss:$8 sps:$4 sm:$0xff]   ;;  %v755_v50 = vld [vmem:[%s1088_s3 + $0xf0] ss:$8 sps:$4 sm:$0xff]  }
  0x24   :  { %v460_v51 = vld [vmem:[%s1090_s5 + $0x80] sm:$0xff]  ;;  %v461_v52 = vld [vmem:[%s1090_s5 + $0x88] sm:$0xff]  ;;  %v463_v57 = vld [vmem:[%s1090_s5 + $0x98] sm:$0xff]  ;;  %v143_v12 = vshrl.u32 %v142_v11, 7  ;;  %vm547_vm0 = vcmask 57344  }
  0x25   :  { %161 = vmatpush1.bf16.msra.mxu0 %v698_v13  ;;  %408 = vmatpush1.bf16.msra.mxu1 %v719_v22  ;;  %v444_v53 = vld [vmem:[%s1090_s5] sm:$0xff]  ;;  %v647_v54 = vpack.c.bf16 %v461_v52, %v460_v51  ;;  %v445_v55 = vld [vmem:[%s1090_s5 + $0x8] sm:$0xff]  ;;  %v651_v59 = vpack.c.bf16 %v463_v57, %v462_v56  ;;  %v446_v60 = vld [vmem:[%s1090_s5 + $0x10] sm:$0xff] }
  0x26   :  { %162 = vmatprep.subr.bf16.mxu0 %v699_v16  ;;  %409 = vmatprep.subr.bf16.mxu1 %v720_v23  ;;  %v649_v58 = vpack.c.bf16 %v445_v55, %v444_v53  ;;  %v447_v61 = vld [vmem:[%s1090_s5 + $0x18] sm:$0xff]  ;;  %v464_v62 = vld [vmem:[%s1090_s5 + $0xa0] sm:$0xff]  ;;  %v465_v63 = vld [vmem:[%s1090_s5 + $0xa8] sm:$0xff]  ;;  %v144_v13 = vsub.s32 0, %v143_v12  ;;  %v148_v15 = vsub.s32 1, %v143_v12 }
  0x27   :  { %v653_v0 = vpack.c.bf16 %v447_v61, %v446_v60  ;;  %v655_v1 = vpack.c.bf16 %v465_v63, %v464_v62  ;;  %v448_v2 = vld [vmem:[%s1090_s5 + $0x20] sm:$0xff]  ;;  %v449_v3 = vld [vmem:[%s1090_s5 + $0x28] sm:$0xff]  ;;  %v466_v4 = vld [vmem:[%s1090_s5 + $0xb0] sm:$0xff] }
  0x28   :  { %v467_v5 = vld [vmem:[%s1090_s5 + $0xb8] sm:$0xff]  ;;  %v657_v6 = vpack.c.bf16 %v449_v3, %v448_v2  ;;  %v450_v8 = vld [vmem:[%s1090_s5 + $0x30] sm:$0xff]  ;;  %v60_v14 = vld [vmem:[%s1087_s2] sm:$0x3] }
  0x29   :  { %163 = vmatpush1.bf16.msra.mxu0 %v701_v17  ;;  %410 = vmatpush1.bf16.msra.mxu1 %v722_v27  ;;  %v659_v7 = vpack.c.bf16 %v467_v5, %v466_v4  ;;  %v451_v9 = vld [vmem:[%s1090_s5 + $0x38] sm:$0xff]  ;;  %v145_v16 = vrot.slane %v60_v14, %v144_v13  ;;  %v149_v17 = vrot.slane %v60_v14, %v148_v15  ;;  %v229_v52 = vld [vmem:[%s1089_s4] sm:$0x3]  ;;  %s816_s4 = smov [#allocation5]  }
  0x2a   :  { %164 = vmatprep.subr.bf16.mxu0 %v702_v20  ;;  %411 = vmatprep.subr.bf16.mxu1 %v723_v28  ;;  %v661_v10 = vpack.c.bf16 %v451_v9, %v450_v8  ;;  %v468_v28 = vld [vmem:[%s1090_s5 + $0xc0] sm:$0xff]  ;;  %v394_v53 = vrot.slane %v229_v52, %v144_v13  ;;  %s555_s19 = sshll.u32 %s816_s4, 4  ;;  %s556_s19 = int_to_ptr.vmem [resolvable:$true] %s555_s19 }
  0x2b   :  { %s786_s20 = scalar_lea.vmem %s556_s19, 16  ;;  %s790_s21 = scalar_lea.vmem %s556_s19, 32 }
  0x2c   :  { %p787_p8 = scmp.ne.s32.totalorder %s556_s19, %s786_s20  ;;  %p791_p9 = scmp.lt.s32.totalorder %s556_s19, %s556_s19 }
  0x2d   :  { %165 = vmatpush1.bf16.msra.mxu0 %v704_v21  ;;  %412 = vmatpush1.bf16.msra.mxu1 %v725_v30  ;;  %p792_p10 = scmp.lt.s32.totalorder %s790_s21, %s786_s20 }
  0x2e   :  { %166 = vmatprep.subr.bf16.mxu0 %v705_v24  ;;  %413 = vmatprep.subr.bf16.mxu1 %v726_v31  ;;  %v452_v31 = vld [vmem:[%s1090_s5 + $0x40] sm:$0xff] }
  0x2f   :  { %p793_p11 = por %p792_p10, %p791_p9 }
  0x31   :  { %167 = vmatpush1.bf16.msra.mxu0 %v707_v25  ;;  %414 = vmatpush1.bf16.msra.mxu1 %v728_v32  ;;  %v453_v32 = vld [vmem:[%s1090_s5 + $0x48] sm:$0xff]  ;;  %p794_p12 = pnand %p793_p11, %p787_p8 }
  0x32   :  { %415 = vmatprep.subr.bf16.mxu1 %v729_v33  ;;  %648 = vmatprep.subr.bf16.mxu0 %v647_v54  ;;  %v665_v33 = vpack.c.bf16 %v453_v32, %v452_v31  ;;  %v398_v54 = vrot.slane %v229_v52, %v148_v15 }
  0x34   :  { %185 = vmatmul.mubr.bf16.vlgmr.msra.gmra.mrb[0].mxu0 %v43_v29  ;;  %v469_v29 = vld [vmem:[%s1090_s5 + $0xc8] sm:$0xff] }
  0x35   :  { %416 = vmatpush1.bf16.msra.mxu1 %v731_v34  ;;  %650 = vmatpush3.bf16.msra.mxu0 %v649_v58  ;;  %v663_v30 = vpack.c.bf16 %v469_v29, %v468_v28  ;;  %v470_v34 = vld [vmem:[%s1090_s5 + $0xd0] sm:$0xff] }
  0x36   :  { %417 = vmatprep.subr.bf16.mxu1 %v732_v35  ;;  %652 = vmatprep.subr.bf16.mxu0 %v651_v59  ;;  %v471_v35 = vld [vmem:[%s1090_s5 + $0xd8] sm:$0xff] }
  0x39   :  { %418 = vmatpush1.bf16.msra.mxu1 %v734_v36  ;;  %654 = vmatpush3.bf16.msra.mxu0 %v653_v0  ;;  %v667_v36 = vpack.c.bf16 %v471_v35, %v470_v34  ;;  %v476_v0 = vld [vmem:[%s1091_s6] sm:$0x1] }
  0x3a   :  { %419 = vmatprep.subr.bf16.mxu1 %v735_v37  ;;  %656 = vmatprep.subr.bf16.mxu0 %v655_v1  ;;  %v454_v37 = vld [vmem:[%s1090_s5 + $0x50] sm:$0xff] }
  0x3d   :  { %420 = vmatpush1.bf16.msra.mxu1 %v737_v38  ;;  %658 = vmatpush3.bf16.msra.mxu0 %v657_v6  ;;  %v455_v38 = vld [vmem:[%s1090_s5 + $0x58] sm:$0xff] }
  0x3e   :  { %421 = vmatprep.subr.bf16.mxu1 %v738_v39  ;;  %660 = vmatprep.subr.bf16.mxu0 %v659_v7  ;;  %v669_v39 = vpack.c.bf16 %v455_v38, %v454_v37 }
  0x41   :  { %422 = vmatpush1.bf16.msra.mxu1 %v740_v40  ;;  %662 = vmatpush3.bf16.msra.mxu0 %v661_v10  ;;  %v472_v40 = vld [vmem:[%s1090_s5 + $0xe0] sm:$0xff] }
  0x42   :  { %423 = vmatprep.subr.bf16.mxu1 %v741_v41  ;;  %664 = vmatprep.subr.bf16.mxu0 %v663_v30  ;;  %v473_v41 = vld [vmem:[%s1090_s5 + $0xe8] sm:$0xff] }
  0x45   :  { %424 = vmatpush1.bf16.msra.mxu1 %v743_v42  ;;  %666 = vmatpush3.bf16.msra.mxu0 %v665_v33  ;;  %v456_v42 = vld [vmem:[%s1090_s5 + $0x60] sm:$0xff] }
  0x46   :  { %425 = vmatprep.subr.bf16.mxu1 %v744_v43  ;;  %668 = vmatprep.subr.bf16.mxu0 %v667_v36  ;;  %v671_v43 = vpack.c.bf16 %v473_v41, %v472_v40 }
  0x49   :  { %426 = vmatpush1.bf16.msra.mxu1 %v746_v44  ;;  %670 = vmatpush3.bf16.msra.mxu0 %v669_v39  ;;  %v457_v44 = vld [vmem:[%s1090_s5 + $0x68] sm:$0xff] }
  0x4a   :  { %427 = vmatprep.subr.bf16.mxu1 %v747_v45  ;;  %v474_v45 = vld [vmem:[%s1090_s5 + $0xf0] sm:$0xff]  ;;  %672 = vmatprep.subr.bf16.mxu0 %v671_v43 }
  0x4d   :  { %428 = vmatpush1.bf16.msra.mxu1 %v749_v46  ;;  %v475_v46 = vld [vmem:[%s1090_s5 + $0xf8] sm:$0xff] }
  0x4e   :  { %429 = vmatprep.subr.bf16.mxu1 %v750_v47  ;;  %v673_v47 = vpack.c.bf16 %v457_v44, %v456_v42 }
  0x50   :  { %674 = vmatpush3.bf16.msra.mxu0 %v673_v47 }
  0x51   :  { %430 = vmatpush1.bf16.msra.mxu1 %v752_v48  ;;  %v675_v48 = vpack.c.bf16 %v475_v46, %v474_v45 }
  0x52   :  { %431 = vmatprep.subr.bf16.mxu1 %v753_v49  ;;  %v458_v49 = vld [vmem:[%s1090_s5 + $0x70] sm:$0xff] }
  0x53   :  { %676 = vmatprep.subr.bf16.mxu0 %v675_v48 }
  0x55   :  { %432 = vmatpush1.bf16.msra.mxu1 %v755_v50  ;;  %v459_v50 = vld [vmem:[%s1090_s5 + $0x78] sm:$0xff] }
  0x56   :  { %v677_v51 = vpack.c.bf16 %v459_v50, %v458_v49 }
  0x58   :  { %678 = vmatpush3.bf16.msra.mxu0 %v677_v51 }
 0x107   :  { %v186_v18 = vpop.f32.mrb[0].mxu0 }
 0x108   :  { %v187_v19 = vadd.f32 %v186_v18, %v145_v16  ;;  %v188_v20 = vpop.f32.mrb[1].mxu0 }
 0x109   :  { %v189_v21 = vadd.f32 %v188_v20, %v149_v17  ;;  %v190_v22 = vpop.f32.mrb[2].mxu0 }
 0x10a   :  { %756 = vtanh.f32 %v187_v19  ;;  %v191_v23 = vpop.f32.mrb[3].mxu0 }
 0x10b   :  { %758 = vtanh.f32 %v189_v21 }
 0x114   :  { %v757_v24 = vpop.eup %756 }
 0x115   :  { %v759_v25 = vpop.eup %758  ;;  %v195_v27 = vpack.c.bf16 %v757_v24, %v757_v24 }
 0x116   :  { %v196_v26 = vpack.c.bf16 %v759_v25, %v759_v25 }
 0x118   :  { %433 = vmatprep.mubr.bf16.mxu1 %v196_v26 }
 0x119   :  { %434 = vmatmul.mubr.bf16.vlgmr.msra.gmra.mrb[0].mxu1 %v195_v27 }
 0x1ec   :  { %v435_v55 = vpop.f32.mrb[0].mxu1 }
 0x1ed   :  { %v436_v56 = vadd.f32 %v435_v55, %v394_v53  ;;  %v437_v57 = vpop.f32.mrb[1].mxu1 }
 0x1ee   :  { %v438_v58 = vadd.f32 %v437_v57, %v398_v54  ;;  %v439_v59 = vpop.f32.mrb[2].mxu1 }
 0x1ef   :  { %v440_v60 = vpop.f32.mrb[3].mxu1 }
 0x1f0   :  { %760 = vtanh.f32 %v438_v58 }
 0x1f1   :  { %762 = vtanh.f32 %v436_v56 }
 0x1fa   :  { %v761_v61 = vpop.eup %760 }
 0x1fb   :  { %v763_v62 = vpop.eup %762  ;;  %541 = vmatprep.mubr.f32.mxu0 %v761_v61 }
 0x1fc   :  { %542 = vmatmul.mubr.f32.vlgmr.msra.gmra.mrb[4].mxu0 %v763_v62 }
 0x2cf   :  { %v644_v63 = vpop.f32.mrb[4].mxu0 }
 0x2d0   :  { %v645_v1 = vpop.f32.mrb[5].mxu0 }
 0x2d1   :  { %v646_v2 = vadd.f32 %v645_v1, %v644_v63 }
 0x2d3   :  { %v544_v3 = vadd.f32 %v646_v2, %v476_v0 }
 0x2d5   :  { %548 = vst.msk [vmem:[#allocation5] sm:$0x1] %vm547_vm0, %v544_v3 }
 0x2d6   :  { %797 = shalt.err (!%p794_p12)
}
 0x2d7   :  { %s798_s6 = scalar_lea.hbm %s1092_s7, 16 }
 0x2d8   :  { %p799_p13 = scmp.ne.s32.totalorder %s1092_s7, %s798_s6  ;;  %p802_p0 = scmp.lt.u32.totalorder %s798_s6, %s1092_s7 }
 0x2da   :  { %p804_p1 = pnand %p802_p0, %p799_p13 }
 0x2dc   :  { %807 = shalt.err (!%p804_p1)
}
 0x2dd   :  { %558 = dma.vmem_to_hbm [thread:$0]  %s556_s19, 16, %s1092_s7, [#allocation4]  }
 0x2de   :  { %810 = dma.done.wait [#allocation4], 16  }
 0x2df   :  { %811 = vsyncadd [#allocation4], 4294967280 }
 0x2e0   :  { %562 = vsyncpa [#allocation3], 1 }
 0x2e1   :  { %563 = vsyncpa [#allocation4], 1 }

</bundles_post_ra>
